<compile_context>
chip_gen: v7x
topology: tpu7x:2x2x1
jax: 0.10.0
libtpu: 0.0.40
codegen_flags: <defaults>
</compile_context>

<pallas_src>
import jax
import jax.numpy as jnp
from jax import lax
from jax.experimental import pallas as pl
from jax.experimental.pallas import tpu as pltpu

# ----- hyper-parameters (consistent with DeepAnT.__init__'s dim1 formula,
# ----- which implies kernel_size=2, stride=1, pool_size=2) -----------------
WINDOW      = 16
PRED_WINDOW = 4
IN_CHANNELS = 4
FILTER1     = 8
FILTER2     = 16
KERNEL      = 2
POOL        = 2
STRIDE      = 1
assert STRIDE == 1, "dim1 formula in the reference module assumes stride=1"

L1   = (WINDOW - KERNEL) // STRIDE + 1      # conv1 output length      (15)
L1P  = L1 // POOL                           # after maxpool1           (7)
L2   = (L1P - KERNEL) // STRIDE + 1         # conv2 output length      (6)
L2P  = L2 // POOL                           # after maxpool2           (3)
DIM1 = int(0.5 * (0.5 * (WINDOW - 1) - 1)) * FILTER2
assert DIM1 == FILTER2 * L2P, (DIM1, FILTER2 * L2P)
OUT_DIM = IN_CHANNELS * PRED_WINDOW         # 16

# Batch-tile limits (lane/N width of every matmul).
MAX_BT  = 1024          # per-block x = (64, 1024) bf16 ~ 128 KiB -> VMEM trivial
LANE_RU = 256           # round batch tile to a multiple of 256 (v6e/v7x MXU; also /128 for v5e)


def _round_up(n, m):
    return ((n + m - 1) // m) * m


# ---------------------------------------------------------------------------
# Pallas kernel: forward pass for a block of `bt` samples (batch on lanes).
#   x_ref : (C*W, bt)           bf16   columns = samples
#   w1_ref: (L1*F1, C*W)        bf16   dense Toeplitz of conv1
#   b1_ref: (L1*F1, 1)          f32    conv1 bias, repeated per position
#   w2_ref: (L2*F2, L1P*F1)     bf16   dense Toeplitz of conv2
#   b2_ref: (L2*F2, 1)          f32
#   wl_ref: (OUT_DIM, L2P*F2)   bf16   linear weight, columns in (l, f2) order
#   bl_ref: (OUT_DIM, 1)        f32
#   o_ref : (OUT_DIM, bt)       f32    lane-dense output
# ---------------------------------------------------------------------------
def deepant_kernel(x_ref, w1_ref, b1_ref, w2_ref, b2_ref, wl_ref, bl_ref,
                   o_ref):
    bt = x_ref.shape[-1]
    x = x_ref[...]                                                # (C*W, bt)

    # ---- conv1 (valid, stride 1): one Toeplitz matmul + bias + ReLU
    h1 = jnp.dot(w1_ref[...], x, preferred_element_type=jnp.float32)
    h1 = jnp.maximum(h1 + b1_ref[...], 0.0)                       # (L1*F1, bt)

    # ---- maxpool1 (floor mode, drops trailing odd position).
    # Rows of h1 are ordered l*F1 + f, so splitting the leading (sublane)
    # axis into (L1P, POOL, F1) is layout-preserving; the pool is a VPU max.
    h1 = h1[: POOL * L1P * FILTER1].reshape(L1P, POOL, FILTER1, bt)
    p1 = h1[:, 0]
    for s in range(1, POOL):
        p1 = jnp.maximum(p1, h1[:, s])                            # (L1P, F1, bt)
    p1 = p1.reshape(L1P * FILTER1, bt).astype(w2_ref.dtype)       # (56, bt)

    # ---- conv2: one Toeplitz matmul + bias + ReLU
    h2 = jnp.dot(w2_ref[...], p1, preferred_element_type=jnp.float32)
    h2 = jnp.maximum(h2 + b2_ref[...], 0.0)                       # (L2*F2, bt)

    # ---- maxpool2
    h2 = h2[: POOL * L2P * FILTER2].reshape(L2P, POOL, FILTER2, bt)
    p2 = h2[:, 0]
    for s in range(1, POOL):
        p2 = jnp.maximum(p2, h2[:, s])                            # (L2P, F2, bt)
    p2 = p2.reshape(L2P * FILTER2, bt).astype(wl_ref.dtype)       # (48, bt)

    # ---- dropout(0.25): identity at inference time.
    # TODO(synk): train-mode dropout masking (RNG) not implemented.

    # ---- flatten + Linear: single (OUT_DIM, 48) @ (48, bt) contraction
    out = jnp.dot(wl_ref[...], p2, preferred_element_type=jnp.float32)
    o_ref[...] = out + bl_ref[...]                                # (OUT_DIM, bt)


# ---------------------------------------------------------------------------
# Wrapper: parameter repacking (Toeplitz expansion, flatten reordering) +
# batch padding + pallas_call.
# ---------------------------------------------------------------------------
def _conv1d_toeplitz(w, in_len, channel_major_cols):
    """Dense matrix M for a valid stride-1 Conv1d with weight w:(F, C, K).

    (M @ x_cols)[l*F + f] = sum_{c,k} w[f, c, k] * x[c, l + k]
    where x_cols index = c*in_len + pos  (channel_major_cols=True)
                      or pos*C + c       (channel_major_cols=False).
    Rows are ordered position-major (l outer, f inner)."""
    F_, C_, K_ = w.shape
    out_len = (in_len - K_) // STRIDE + 1
    rows = []
    for l in range(out_len):
        if channel_major_cols:
            blk = jnp.zeros((F_, C_, in_len), w.dtype).at[:, :, l:l + K_].set(w)
            rows.append(blk.reshape(F_, C_ * in_len))
        else:
            blk = jnp.zeros((F_, in_len, C_), w.dtype).at[:, l:l + K_, :].set(
                jnp.transpose(w, (0, 2, 1)))
            rows.append(blk.reshape(F_, in_len * C_))
    return jnp.concatenate(rows, axis=0)


@jax.jit
def deepant_forward(x, w1, b1, w2, b2, wl, bl):
    B = x.shape[0]
    # Adaptive lane tile: multiple of 256, capped at MAX_BT (static under jit).
    bt = min(MAX_BT, _round_up(B, LANE_RU))
    b_pad = pl.cdiv(B, bt) * bt

    # Batch on the lane axis: (B, C, W) -> (C*W, B_pad), bf16.
    # (Pure layout plumbing; XLA fuses reshape/transpose/pad/convert into the
    #  single read of x it needs anyway.)
    x_t = x.reshape(B, IN_CHANNELS * WINDOW).T
    x_t = jnp.pad(x_t, ((0, 0), (0, b_pad - B))).astype(jnp.bfloat16)

    # Conv layers as dense Toeplitz matrices (one MXU matmul each).
    w1_full = _conv1d_toeplitz(w1, WINDOW, channel_major_cols=True
                               ).astype(jnp.bfloat16)             # (L1*F1, C*W)
    w2_full = _conv1d_toeplitz(w2, L1P, channel_major_cols=False
                               ).astype(jnp.bfloat16)             # (L2*F2, L1P*F1)
    b1_full = jnp.tile(b1, L1).reshape(L1 * FILTER1, 1).astype(jnp.float32)
    b2_full = jnp.tile(b2, L2).reshape(L2 * FILTER2, 1).astype(jnp.float32)

    # torch view(-1, dim1) flattens (F2, L2P) as f2*L2P + l; the kernel's p2
    # rows are l*F2 + f2 -> reorder the linear weight's columns accordingly.
    wl_r = wl.reshape(OUT_DIM, FILTER2, L2P).transpose(0, 2, 1)
    wl_r = wl_r.reshape(OUT_DIM, L2P * FILTER2).astype(jnp.bfloat16)
    bl_c = bl.reshape(OUT_DIM, 1).astype(jnp.float32)

    out = pl.pallas_call(
        deepant_kernel,
        out_shape=jax.ShapeDtypeStruct((OUT_DIM, b_pad), jnp.float32),
        grid=(b_pad // bt,),
        in_specs=[
            pl.BlockSpec((IN_CHANNELS * WINDOW, bt), lambda b: (0, b)),
            pl.BlockSpec((L1 * FILTER1, IN_CHANNELS * WINDOW), lambda b: (0, 0)),
            pl.BlockSpec((L1 * FILTER1, 1), lambda b: (0, 0)),
            pl.BlockSpec((L2 * FILTER2, L1P * FILTER1), lambda b: (0, 0)),
            pl.BlockSpec((L2 * FILTER2, 1), lambda b: (0, 0)),
            pl.BlockSpec((OUT_DIM, L2P * FILTER2), lambda b: (0, 0)),
            pl.BlockSpec((OUT_DIM, 1), lambda b: (0, 0)),
        ],
        out_specs=pl.BlockSpec((OUT_DIM, bt), lambda b: (0, b)),
        compiler_params=pltpu.CompilerParams(
            dimension_semantics=("parallel",)),
    )(x_t, w1_full, b1_full, w2_full, b2_full, wl_r, bl_c)

    out = out[:, :B].T                                            # (B, OUT_DIM)
    return out.reshape(B, PRED_WINDOW, IN_CHANNELS)


# ---------------------------------------------------------------------------
# Pure-JAX reference (torch-faithful).  matmul_in_dtype=jnp.bfloat16 mimics
# the kernel's mixed precision (bf16 matmul inputs, f32 accumulation) so the
# comparison is numerically tight; jnp.float32 gives the original semantics.
# ---------------------------------------------------------------------------
def deepant_reference(x, w1, b1, w2, b2, wl, bl, matmul_in_dtype=jnp.float32):
    cast = lambda a: a.astype(matmul_in_dtype).astype(jnp.float32)

    def conv1d(xx, w, b):
        y = lax.conv_general_dilated(
            cast(xx), cast(w), window_strides=(STRIDE,), padding="VALID",
            dimension_numbers=("NCH", "OIH", "NCH"),
            precision=lax.Precision.HIGHEST)
        return y + b[None, :, None]

    def maxpool(xx, p):
        Bq, Cq, Lq = xx.shape
        lp = Lq // p
        return xx[:, :, :lp * p].reshape(Bq, Cq, lp, p).max(-1)

    h = jax.nn.relu(conv1d(x, w1, b1))
    h = maxpool(h, POOL)
    h = jax.nn.relu(conv1d(h, w2, b2))
    h = maxpool(h, POOL)
    flat = h.reshape(-1, DIM1)
    out = jnp.dot(cast(flat), cast(wl).T,
                  precision=lax.Precision.HIGHEST) + bl
    return out.reshape(-1, PRED_WINDOW, IN_CHANNELS)


if __name__ == "__main__":
    key = jax.random.PRNGKey(0)
    ks = jax.random.split(key, 7)
    B = 2
    x  = jax.random.normal(ks[0], (B, IN_CHANNELS, WINDOW), jnp.float32)
    w1 = jax.random.normal(ks[1], (FILTER1, IN_CHANNELS, KERNEL), jnp.float32) * 0.2
    b1 = jax.random.normal(ks[2], (FILTER1,), jnp.float32) * 0.1
    w2 = jax.random.normal(ks[3], (FILTER2, FILTER1, KERNEL), jnp.float32) * 0.2
    b2 = jax.random.normal(ks[4], (FILTER2,), jnp.float32) * 0.1
    wl = jax.random.normal(ks[5], (OUT_DIM, DIM1), jnp.float32) * 0.1
    bl = jax.random.normal(ks[6], (OUT_DIM,), jnp.float32) * 0.1

    out = jax.block_until_ready(deepant_forward(x, w1, b1, w2, b2, wl, bl))
    assert out.shape == (B, PRED_WINDOW, IN_CHANNELS), out.shape

    # Tight check against a reference that uses the same bf16-rounded matmul
    # inputs (only f32 accumulation order differs).
    ref_bf16 = deepant_reference(x, w1, b1, w2, b2, wl, bl, jnp.bfloat16)
    err = float(jnp.max(jnp.abs(out - ref_bf16)))
    if err > 2e-3:
        raise AssertionError(f"Pallas output mismatch vs matched reference: {err}")

    # Loose sanity check against the full-f32 (original PyTorch) numerics.
    ref_f32 = deepant_reference(x, w1, b1, w2, b2, wl, bl, jnp.float32)
    err32 = float(jnp.max(jnp.abs(out - ref_f32)))
    if err32 > 1e-1:
        raise AssertionError(f"Pallas output mismatch vs f32 reference: {err32}")

    print("KERNEL_OK")
</pallas_src>

<mosaic_0001>
module attributes {stable_mosaic.version = 11 : i64} {
  func.func @deepant_kernel(%arg0: i32, %arg1: memref<64x256xbf16, #tpu.memory_space<vmem>>, %arg2: memref<120x64xbf16, #tpu.memory_space<vmem>>, %arg3: memref<120x1xf32, #tpu.memory_space<vmem>>, %arg4: memref<96x56xbf16, #tpu.memory_space<vmem>>, %arg5: memref<96x1xf32, #tpu.memory_space<vmem>>, %arg6: memref<16x48xbf16, #tpu.memory_space<vmem>>, %arg7: memref<16x1xf32, #tpu.memory_space<vmem>>, %arg8: memref<16x256xf32, #tpu.memory_space<vmem>>) attributes {dimension_semantics = [#tpu.dimension_semantics<parallel>], iteration_bounds = array<i64: 1>, scalar_prefetch = 0 : i64, scratch_operands = 0 : i64, tpu.core_type = #tpu.core_type<tc>, window_params = [{transform_indices = @transform_0, window_bounds = array<i64: 64, 256>}, {pipeline_mode = #tpu.pipeline_mode<synchronous>, transform_indices = @transform_1, window_bounds = array<i64: 120, 64>}, {pipeline_mode = #tpu.pipeline_mode<synchronous>, transform_indices = @transform_2, window_bounds = array<i64: 120, 1>}, {pipeline_mode = #tpu.pipeline_mode<synchronous>, transform_indices = @transform_3, window_bounds = array<i64: 96, 56>}, {pipeline_mode = #tpu.pipeline_mode<synchronous>, transform_indices = @transform_4, window_bounds = array<i64: 96, 1>}, {pipeline_mode = #tpu.pipeline_mode<synchronous>, transform_indices = @transform_5, window_bounds = array<i64: 16, 48>}, {pipeline_mode = #tpu.pipeline_mode<synchronous>, transform_indices = @transform_6, window_bounds = array<i64: 16, 1>}, {transform_indices = @transform_7, window_bounds = array<i64: 16, 256>}]} {
    %c0 = arith.constant 0 : index
    %c0_0 = arith.constant 0 : index
    %0 = vector.load %arg1[%c0, %c0_0] : memref<64x256xbf16, #tpu.memory_space<vmem>>, vector<64x256xbf16>
    %c0_1 = arith.constant 0 : index
    %c0_2 = arith.constant 0 : index
    %1 = vector.load %arg2[%c0_1, %c0_2] : memref<120x64xbf16, #tpu.memory_space<vmem>>, vector<120x64xbf16>
    %cst = arith.constant dense<0.000000e+00> : vector<120x256xf32>
    %2 = tpu.matmul %1, %0, %cst {dimension_numbers = #tpu.dot_dimension_numbers<[1], [0], [0], [1], [0, 0, 1, 1], [], []>} : vector<120x64xbf16>, vector<64x256xbf16>, vector<120x256xf32> -> vector<120x256xf32>
    %c0_3 = arith.constant 0 : index
    %c0_4 = arith.constant 0 : index
    %3 = vector.load %arg3[%c0_3, %c0_4] : memref<120x1xf32, #tpu.memory_space<vmem>>, vector<120x1xf32>
    %4 = vector.broadcast %3 : vector<120x1xf32> to vector<120x256xf32>
    %5 = arith.addf %2, %4 : vector<120x256xf32>
    %cst_5 = arith.constant 0.000000e+00 : f32
    %6 = vector.broadcast %cst_5 : f32 to vector<120x256xf32>
    %7 = arith.maximumf %5, %6 : vector<120x256xf32>
    %8 = vector.extract_strided_slice %7 {offsets = [0, 0], sizes = [112, 256], strides = [1, 1]} : vector<120x256xf32> to vector<112x256xf32>
    %9 = vector.shape_cast %8 : vector<112x256xf32> to vector<7x2x8x256xf32>
    %10 = vector.extract_strided_slice %9 {offsets = [0, 0, 0, 0], sizes = [7, 1, 8, 256], strides = [1, 1, 1, 1]} : vector<7x2x8x256xf32> to vector<7x1x8x256xf32>
    %11 = vector.shape_cast %10 : vector<7x1x8x256xf32> to vector<7x8x256xf32>
    %12 = vector.extract_strided_slice %9 {offsets = [0, 1, 0, 0], sizes = [7, 1, 8, 256], strides = [1, 1, 1, 1]} : vector<7x2x8x256xf32> to vector<7x1x8x256xf32>
    %13 = vector.shape_cast %12 : vector<7x1x8x256xf32> to vector<7x8x256xf32>
    %14 = arith.maximumf %11, %13 : vector<7x8x256xf32>
    %15 = vector.shape_cast %14 : vector<7x8x256xf32> to vector<56x256xf32>
    %16 = arith.truncf %15 : vector<56x256xf32> to vector<56x256xbf16>
    %c0_6 = arith.constant 0 : index
    %c0_7 = arith.constant 0 : index
    %17 = vector.load %arg4[%c0_6, %c0_7] : memref<96x56xbf16, #tpu.memory_space<vmem>>, vector<96x56xbf16>
    %cst_8 = arith.constant dense<0.000000e+00> : vector<96x256xf32>
    %18 = tpu.matmul %17, %16, %cst_8 {dimension_numbers = #tpu.dot_dimension_numbers<[1], [0], [0], [1], [0, 0, 1, 1], [], []>} : vector<96x56xbf16>, vector<56x256xbf16>, vector<96x256xf32> -> vector<96x256xf32>
    %c0_9 = arith.constant 0 : index
    %c0_10 = arith.constant 0 : index
    %19 = vector.load %arg5[%c0_9, %c0_10] : memref<96x1xf32, #tpu.memory_space<vmem>>, vector<96x1xf32>
    %20 = vector.broadcast %19 : vector<96x1xf32> to vector<96x256xf32>
    %21 = arith.addf %18, %20 : vector<96x256xf32>
    %cst_11 = arith.constant 0.000000e+00 : f32
    %22 = vector.broadcast %cst_11 : f32 to vector<96x256xf32>
    %23 = arith.maximumf %21, %22 : vector<96x256xf32>
    %24 = vector.shape_cast %23 : vector<96x256xf32> to vector<3x2x16x256xf32>
    %25 = vector.extract_strided_slice %24 {offsets = [0, 0, 0, 0], sizes = [3, 1, 16, 256], strides = [1, 1, 1, 1]} : vector<3x2x16x256xf32> to vector<3x1x16x256xf32>
    %26 = vector.shape_cast %25 : vector<3x1x16x256xf32> to vector<3x16x256xf32>
    %27 = vector.extract_strided_slice %24 {offsets = [0, 1, 0, 0], sizes = [3, 1, 16, 256], strides = [1, 1, 1, 1]} : vector<3x2x16x256xf32> to vector<3x1x16x256xf32>
    %28 = vector.shape_cast %27 : vector<3x1x16x256xf32> to vector<3x16x256xf32>
    %29 = arith.maximumf %26, %28 : vector<3x16x256xf32>
    %30 = vector.shape_cast %29 : vector<3x16x256xf32> to vector<48x256xf32>
    %31 = arith.truncf %30 : vector<48x256xf32> to vector<48x256xbf16>
    %c0_12 = arith.constant 0 : index
    %c0_13 = arith.constant 0 : index
    %32 = vector.load %arg6[%c0_12, %c0_13] : memref<16x48xbf16, #tpu.memory_space<vmem>>, vector<16x48xbf16>
    %cst_14 = arith.constant dense<0.000000e+00> : vector<16x256xf32>
    %33 = tpu.matmul %32, %31, %cst_14 {dimension_numbers = #tpu.dot_dimension_numbers<[1], [0], [0], [1], [0, 0, 1, 1], [], []>} : vector<16x48xbf16>, vector<48x256xbf16>, vector<16x256xf32> -> vector<16x256xf32>
    %c0_15 = arith.constant 0 : index
    %c0_16 = arith.constant 0 : index
    %34 = vector.load %arg7[%c0_15, %c0_16] : memref<16x1xf32, #tpu.memory_space<vmem>>, vector<16x1xf32>
    %35 = vector.broadcast %34 : vector<16x1xf32> to vector<16x256xf32>
    %36 = arith.addf %33, %35 : vector<16x256xf32>
    %c0_17 = arith.constant 0 : index
    %c0_18 = arith.constant 0 : index
    %37 = vector.load %arg8[%c0_17, %c0_18] : memref<16x256xf32, #tpu.memory_space<vmem>>, vector<16x256xf32>
    tpu.vector_store %arg8[%c0_17, %c0_18], %36 {strides = array<i32>} : memref<16x256xf32, #tpu.memory_space<vmem>>, vector<16x256xf32>,
    return
  }
  func.func @transform_0(%arg0: i32) -> (i32, i32) {
    %c0_i32 = arith.constant 0 : i32
    %c0_i32_0 = arith.constant 0 : i32
    return %c0_i32, %arg0 : i32, i32
  }
  func.func @transform_1(%arg0: i32) -> (i32, i32) {
    %c0_i32 = arith.constant 0 : i32
    %c0_i32_0 = arith.constant 0 : i32
    %c0_i32_1 = arith.constant 0 : i32
    return %c0_i32, %c0_i32_0 : i32, i32
  }
  func.func @transform_2(%arg0: i32) -> (i32, i32) {
    %c0_i32 = arith.constant 0 : i32
    %c0_i32_0 = arith.constant 0 : i32
    %c0_i32_1 = arith.constant 0 : i32
    return %c0_i32, %c0_i32_0 : i32, i32
  }
  func.func @transform_3(%arg0: i32) -> (i32, i32) {
    %c0_i32 = arith.constant 0 : i32
    %c0_i32_0 = arith.constant 0 : i32
    %c0_i32_1 = arith.constant 0 : i32
    return %c0_i32, %c0_i32_0 : i32, i32
  }
  func.func @transform_4(%arg0: i32) -> (i32, i32) {
    %c0_i32 = arith.constant 0 : i32
    %c0_i32_0 = arith.constant 0 : i32
    %c0_i32_1 = arith.constant 0 : i32
    return %c0_i32, %c0_i32_0 : i32, i32
  }
  func.func @transform_5(%arg0: i32) -> (i32, i32) {
    %c0_i32 = arith.constant 0 : i32
    %c0_i32_0 = arith.constant 0 : i32
    %c0_i32_1 = arith.constant 0 : i32
    return %c0_i32, %c0_i32_0 : i32, i32
  }
  func.func @transform_6(%arg0: i32) -> (i32, i32) {
    %c0_i32 = arith.constant 0 : i32
    %c0_i32_0 = arith.constant 0 : i32
    %c0_i32_1 = arith.constant 0 : i32
    return %c0_i32, %c0_i32_0 : i32, i32
  }
  func.func @transform_7(%arg0: i32) -> (i32, i32) {
    %c0_i32 = arith.constant 0 : i32
    %c0_i32_0 = arith.constant 0 : i32
    return %c0_i32, %arg0 : i32, i32
  }
}

</mosaic_0001>

<bundles_post_ra>
// kernel: tile.13
= control target key start
LH: loop header
LB: loop body
LE: loop exit
PB: predicated region body
PF: predicated region fallthrough
CT: control target
= control target key end

     0   :  { %s28_s0 = inlined_call_operand.vmem [shape: f32[8], index: 0, kind: input, shape index: {}]   ;;  %s29_s1 = inlined_call_operand.vmem [shape: f32[15,8], index: 1, kind: output, shape index: {}]  }
   0x1   :  { %v4_v0 = vld [vmem:[%s28_s0] ss:$0 sm:$0xff] }
   0x2   :  { %5 = vst [vmem:[%s29_s1] sm:$0xff] %v4_v0  ;;  %8 = vst [vmem:[%s29_s1 + $0x8] sm:$0xff] %v4_v0 }

// kernel: tile.0
= control target key start
LH: loop header
LB: loop body
LE: loop exit
PB: predicated region body
PF: predicated region fallthrough
CT: control target
= control target key end

     0   :  { %vm3_vm0 = vcmask 7168   ;;  %s177_s8 = smov 126   ;;  %s178_s9 = smov 127   ;;  %s349_s0 = inlined_call_operand.vmem [shape: f32[15,8], index: 0, kind: input, shape index: {}]   ;;  %s350_s1 = inlined_call_operand.vmem [shape: f32[120,1], index: 1, kind: output, shape index: {}]  }
   0x1   :  { %v30_v0 = vld [vmem:[%s349_s0] sm:$0xff]   ;;  %v142_v1 = vld [vmem:[%s349_s0 + $0x8] sm:$0x7f]   ;;  %s179_s20 = smov 125   ;;  %s180_s29 = smov 124  }
   0x2   :  { %31 = vrot.lane.b32.xlu1 %v30_v0, %s177_s8  ;;  %14 = vrot.lane.b32.xlu0 %v30_v0, %s178_s9  ;;  %4 = vst.msk [vmem:[%s350_s1] ss:$8 sm:$0xf] %vm3_vm0, %v30_v0   ;;  %5 = vst.msk [vmem:[%s350_s1] ss:$8 sm:$0xf0] %vm3_vm0, %v30_v0  }
   0x3   :  { %v137_v2 = vld [vmem:[%s349_s0 + $0x8] sm:$0x7f]   ;;  %s181_s3 = smov 123   ;;  %s182_s6 = smov 122  }
   0x4   :  { %v147_v3 = vld [vmem:[%s349_s0 + $0x8] sm:$0x7f]  }
   0x5   :  { %v152_v4 = vld [vmem:[%s349_s0 + $0x8] sm:$0x7f]  }
   0x6   :  { %40 = vrot.lane.b32.xlu1 %v142_v1, %s177_s8  ;;  %23 = vrot.lane.b32.xlu0 %v137_v2, %s178_s9  ;;  %v132_v5 = vld [vmem:[%s349_s0 + $0x8] sm:$0x7f]  }
   0x7   :  { %133 = vst.msk [vmem:[%s350_s1 + $0x40] ss:$8 sm:$0xf] %vm3_vm0, %v132_v5   ;;  %134 = vst.msk [vmem:[%s350_s1 + $0x40] ss:$8 sm:$0x70] %vm3_vm0, %v132_v5  }
   0x8   :  { %v157_v6 = vld [vmem:[%s349_s0 + $0x8] sm:$0x7f]  }
   0x9   :  { %v162_v7 = vld [vmem:[%s349_s0 + $0x8] sm:$0x7f]  }
   0xa   :  { %57 = vrot.lane.b32.xlu1 %v147_v3, %s179_s20  ;;  %48 = vrot.lane.b32.xlu0 %v30_v0, %s179_s20  ;;  %v167_v8 = vld [vmem:[%s349_s0 + $0x8] sm:$0x7f]   ;;  %s183_s0 = smov 121  }
   0xe   :  { %74 = vrot.lane.b32.xlu1 %v152_v4, %s180_s29  ;;  %65 = vrot.lane.b32.xlu0 %v30_v0, %s180_s29 }
  0x12   :  { %91 = vrot.lane.b32.xlu1 %v157_v6, %s181_s3  ;;  %82 = vrot.lane.b32.xlu0 %v30_v0, %s181_s3 }
  0x16   :  { %108 = vrot.lane.b32.xlu1 %v162_v7, %s182_s6  ;;  %99 = vrot.lane.b32.xlu0 %v30_v0, %s182_s6 }
  0x1a   :  { %125 = vrot.lane.b32.xlu1 %v167_v8, %s183_s0  ;;  %116 = vrot.lane.b32.xlu0 %v30_v0, %s183_s0 }
  0x74   :  { %v32_v9 = vpop.permute.xlu1 %31   ;;  %v15_v10 = vpop.permute.xlu0 %14  }
  0x75   :  { %140 = vst.msk [vmem:[%s350_s1 + $0x2] ss:$8 sm:$0xf] %vm3_vm0, %v32_v9   ;;  %141 = vst.msk [vmem:[%s350_s1 + $0x2] ss:$8 sm:$0xf0] %vm3_vm0, %v32_v9  }
  0x76   :  { %135 = vst.msk [vmem:[%s350_s1 + $0x1] ss:$8 sm:$0xf] %vm3_vm0, %v15_v10   ;;  %136 = vst.msk [vmem:[%s350_s1 + $0x1] ss:$8 sm:$0xf0] %vm3_vm0, %v15_v10  }
  0x78   :  { %v41_v11 = vpop.permute.xlu1 %40   ;;  %v24_v12 = vpop.permute.xlu0 %23  }
  0x79   :  { %143 = vst.msk [vmem:[%s350_s1 + $0x42] ss:$8 sm:$0xf] %vm3_vm0, %v41_v11   ;;  %144 = vst.msk [vmem:[%s350_s1 + $0x42] ss:$8 sm:$0x70] %vm3_vm0, %v41_v11  }
  0x7a   :  { %138 = vst.msk [vmem:[%s350_s1 + $0x41] ss:$8 sm:$0xf] %vm3_vm0, %v24_v12   ;;  %139 = vst.msk [vmem:[%s350_s1 + $0x41] ss:$8 sm:$0x70] %vm3_vm0, %v24_v12  }
  0x7c   :  { %v58_v13 = vpop.permute.xlu1 %57   ;;  %v49_v14 = vpop.permute.xlu0 %48  }
  0x7d   :  { %148 = vst.msk [vmem:[%s350_s1 + $0x43] ss:$8 sm:$0xf] %vm3_vm0, %v58_v13   ;;  %149 = vst.msk [vmem:[%s350_s1 + $0x43] ss:$8 sm:$0x70] %vm3_vm0, %v58_v13  }
  0x7e   :  { %145 = vst.msk [vmem:[%s350_s1 + $0x3] ss:$8 sm:$0xf] %vm3_vm0, %v49_v14   ;;  %146 = vst.msk [vmem:[%s350_s1 + $0x3] ss:$8 sm:$0xf0] %vm3_vm0, %v49_v14  }
  0x80   :  { %v75_v15 = vpop.permute.xlu1 %74   ;;  %v66_v16 = vpop.permute.xlu0 %65  }
  0x81   :  { %153 = vst.msk [vmem:[%s350_s1 + $0x44] ss:$8 sm:$0xf] %vm3_vm0, %v75_v15   ;;  %154 = vst.msk [vmem:[%s350_s1 + $0x44] ss:$8 sm:$0x70] %vm3_vm0, %v75_v15  }
  0x82   :  { %150 = vst.msk [vmem:[%s350_s1 + $0x4] ss:$8 sm:$0xf] %vm3_vm0, %v66_v16   ;;  %151 = vst.msk [vmem:[%s350_s1 + $0x4] ss:$8 sm:$0xf0] %vm3_vm0, %v66_v16  }
  0x84   :  { %v92_v17 = vpop.permute.xlu1 %91   ;;  %v83_v18 = vpop.permute.xlu0 %82  }
  0x85   :  { %158 = vst.msk [vmem:[%s350_s1 + $0x45] ss:$8 sm:$0xf] %vm3_vm0, %v92_v17   ;;  %159 = vst.msk [vmem:[%s350_s1 + $0x45] ss:$8 sm:$0x70] %vm3_vm0, %v92_v17  }
  0x86   :  { %155 = vst.msk [vmem:[%s350_s1 + $0x5] ss:$8 sm:$0xf] %vm3_vm0, %v83_v18   ;;  %156 = vst.msk [vmem:[%s350_s1 + $0x5] ss:$8 sm:$0xf0] %vm3_vm0, %v83_v18  }
  0x88   :  { %v109_v19 = vpop.permute.xlu1 %108   ;;  %v100_v20 = vpop.permute.xlu0 %99  }
  0x89   :  { %163 = vst.msk [vmem:[%s350_s1 + $0x46] ss:$8 sm:$0xf] %vm3_vm0, %v109_v19   ;;  %164 = vst.msk [vmem:[%s350_s1 + $0x46] ss:$8 sm:$0x70] %vm3_vm0, %v109_v19  }
  0x8a   :  { %160 = vst.msk [vmem:[%s350_s1 + $0x6] ss:$8 sm:$0xf] %vm3_vm0, %v100_v20   ;;  %161 = vst.msk [vmem:[%s350_s1 + $0x6] ss:$8 sm:$0xf0] %vm3_vm0, %v100_v20  }
  0x8c   :  { %v126_v21 = vpop.permute.xlu1 %125   ;;  %v117_v22 = vpop.permute.xlu0 %116  }
  0x8d   :  { %168 = vst.msk [vmem:[%s350_s1 + $0x47] ss:$8 sm:$0xf] %vm3_vm0, %v126_v21   ;;  %169 = vst.msk [vmem:[%s350_s1 + $0x47] ss:$8 sm:$0x70] %vm3_vm0, %v126_v21  }
  0x8e   :  { %165 = vst.msk [vmem:[%s350_s1 + $0x7] ss:$8 sm:$0xf] %vm3_vm0, %v117_v22   ;;  %166 = vst.msk [vmem:[%s350_s1 + $0x7] ss:$8 sm:$0xf0] %vm3_vm0, %v117_v22  }

// kernel: tile.18
= control target key start
LH: loop header
LB: loop body
LE: loop exit
PB: predicated region body
PF: predicated region fallthrough
CT: control target
= control target key end

     0   :  { %s22_s0 = inlined_call_operand.vmem [shape: f32[16], index: 0, kind: input, shape index: {}]   ;;  %s23_s1 = inlined_call_operand.vmem [shape: f32[6,16], index: 1, kind: output, shape index: {}]  }
   0x1   :  { %v4_v0 = vld [vmem:[%s22_s0] ss:$0 sm:$0xff] }
   0x2   :  { %5 = vst [vmem:[%s23_s1] sm:$0xff] %v4_v0 }

// kernel: tile.1
= control target key start
LH: loop header
LB: loop body
LE: loop exit
PB: predicated region body
PF: predicated region fallthrough
CT: control target
= control target key end

     0   :  { %s217_s10 = smov 127   ;;  %s218_s11 = smov 125   ;;  %vm3_vm0 = vcmask 7168   ;;  %s482_s0 = inlined_call_operand.vmem [shape: f32[6,16], index: 0, kind: input, shape index: {}]   ;;  %s483_s1 = inlined_call_operand.vmem [shape: f32[96,1], index: 1, kind: output, shape index: {}]  }
   0x1   :  { %v7_v0 = vld [vmem:[%s482_s0] sm:$0x3f]   ;;  %s219_s16 = smov 126   ;;  %s220_s17 = smov 124  }
   0x2   :  { %v27_v1 = vld [vmem:[%s482_s0] sm:$0x3f]   ;;  %8 = vrot.lane.b32.xlu0 %v7_v0, %s217_s10  ;;  %s221_s22 = smov 123   ;;  %s222_s23 = smov 122  }
   0x3   :  { %28 = vrot.lane.b32.xlu1 %v27_v1, %s218_s11  ;;  %v17_v2 = vld [vmem:[%s482_s0] sm:$0x3f]   ;;  %s223_s28 = smov 121   ;;  %s224_s29 = smov 120  }
   0x4   :  { %v37_v3 = vld [vmem:[%s482_s0] sm:$0x3f]   ;;  %s225_s13 = smov 119   ;;  %s226_s14 = smov 118  }
   0x5   :  { %v47_v4 = vld [vmem:[%s482_s0] sm:$0x3f]   ;;  %s227_s19 = smov 117   ;;  %s228_s20 = smov 116  }
   0x6   :  { %18 = vrot.lane.b32.xlu0 %v17_v2, %s219_s16  ;;  %v57_v5 = vld [vmem:[%s482_s0] sm:$0x3f]   ;;  %s229_s25 = smov 115   ;;  %s230_s26 = smov 114  }
   0x7   :  { %38 = vrot.lane.b32.xlu1 %v37_v3, %s220_s17  ;;  %v67_v6 = vld [vmem:[%s482_s0] sm:$0x3f]  }
   0x8   :  { %v77_v7 = vld [vmem:[%s482_s0] sm:$0x3f]  }
   0x9   :  { %v87_v8 = vld [vmem:[%s482_s0] sm:$0x3f]  }
   0xa   :  { %48 = vrot.lane.b32.xlu0 %v47_v4, %s221_s22  ;;  %v97_v9 = vld [vmem:[%s482_s0] sm:$0x3f]  }
   0xb   :  { %58 = vrot.lane.b32.xlu1 %v57_v5, %s222_s23  ;;  %v2_v10 = vld [vmem:[%s482_s0] sm:$0x3f]  }
   0xc   :  { %4 = vst.msk [vmem:[%s483_s1] ss:$16 sm:$0x3] %vm3_vm0, %v2_v10   ;;  %5 = vst.msk [vmem:[%s483_s1] ss:$16 sm:$0xc] %vm3_vm0, %v2_v10  }
   0xd   :  { %6 = vst.msk [vmem:[%s483_s1] ss:$16 sm:$0x30] %vm3_vm0, %v2_v10   ;;  %v107_v11 = vld [vmem:[%s482_s0] sm:$0x3f]  }
   0xe   :  { %68 = vrot.lane.b32.xlu0 %v67_v6, %s223_s28  ;;  %v117_v12 = vld [vmem:[%s482_s0] sm:$0x3f]  }
   0xf   :  { %78 = vrot.lane.b32.xlu1 %v77_v7, %s224_s29  ;;  %v127_v13 = vld [vmem:[%s482_s0] sm:$0x3f]  }
  0x10   :  { %v137_v14 = vld [vmem:[%s482_s0] sm:$0x3f]  }
  0x11   :  { %v147_v15 = vld [vmem:[%s482_s0] sm:$0x3f]   ;;  %s231_s0 = smov 113  }
  0x12   :  { %88 = vrot.lane.b32.xlu0 %v87_v8, %s225_s13 }
  0x13   :  { %98 = vrot.lane.b32.xlu1 %v97_v9, %s226_s14 }
  0x16   :  { %108 = vrot.lane.b32.xlu0 %v107_v11, %s227_s19 }
  0x17   :  { %118 = vrot.lane.b32.xlu1 %v117_v12, %s228_s20 }
  0x1a   :  { %128 = vrot.lane.b32.xlu0 %v127_v13, %s229_s25 }
  0x1b   :  { %138 = vrot.lane.b32.xlu1 %v137_v14, %s230_s26 }
  0x1e   :  { %148 = vrot.lane.b32.xlu0 %v147_v15, %s231_s0 }
  0x74   :  { %v9_v16 = vpop.permute.xlu0 %8  }
  0x75   :  { %v29_v17 = vpop.permute.xlu1 %28   ;;  %157 = vst.msk [vmem:[%s483_s1 + $0x1] ss:$16 sm:$0x3] %vm3_vm0, %v9_v16   ;;  %158 = vst.msk [vmem:[%s483_s1 + $0x1] ss:$16 sm:$0xc] %vm3_vm0, %v9_v16  }
  0x76   :  { %159 = vst.msk [vmem:[%s483_s1 + $0x1] ss:$16 sm:$0x30] %vm3_vm0, %v9_v16   ;;  %163 = vst.msk [vmem:[%s483_s1 + $0x3] ss:$16 sm:$0x3] %vm3_vm0, %v29_v17  }
  0x77   :  { %164 = vst.msk [vmem:[%s483_s1 + $0x3] ss:$16 sm:$0xc] %vm3_vm0, %v29_v17   ;;  %165 = vst.msk [vmem:[%s483_s1 + $0x3] ss:$16 sm:$0x30] %vm3_vm0, %v29_v17  }
  0x78   :  { %v19_v18 = vpop.permute.xlu0 %18  }
  0x79   :  { %v39_v19 = vpop.permute.xlu1 %38   ;;  %160 = vst.msk [vmem:[%s483_s1 + $0x2] ss:$16 sm:$0x3] %vm3_vm0, %v19_v18   ;;  %161 = vst.msk [vmem:[%s483_s1 + $0x2] ss:$16 sm:$0xc] %vm3_vm0, %v19_v18  }
  0x7a   :  { %162 = vst.msk [vmem:[%s483_s1 + $0x2] ss:$16 sm:$0x30] %vm3_vm0, %v19_v18   ;;  %166 = vst.msk [vmem:[%s483_s1 + $0x4] ss:$16 sm:$0x3] %vm3_vm0, %v39_v19  }
  0x7b   :  { %167 = vst.msk [vmem:[%s483_s1 + $0x4] ss:$16 sm:$0xc] %vm3_vm0, %v39_v19   ;;  %168 = vst.msk [vmem:[%s483_s1 + $0x4] ss:$16 sm:$0x30] %vm3_vm0, %v39_v19  }
  0x7c   :  { %v49_v20 = vpop.permute.xlu0 %48  }
  0x7d   :  { %v59_v21 = vpop.permute.xlu1 %58   ;;  %169 = vst.msk [vmem:[%s483_s1 + $0x5] ss:$16 sm:$0x3] %vm3_vm0, %v49_v20   ;;  %170 = vst.msk [vmem:[%s483_s1 + $0x5] ss:$16 sm:$0xc] %vm3_vm0, %v49_v20  }
  0x7e   :  { %171 = vst.msk [vmem:[%s483_s1 + $0x5] ss:$16 sm:$0x30] %vm3_vm0, %v49_v20   ;;  %172 = vst.msk [vmem:[%s483_s1 + $0x6] ss:$16 sm:$0x3] %vm3_vm0, %v59_v21  }
  0x7f   :  { %173 = vst.msk [vmem:[%s483_s1 + $0x6] ss:$16 sm:$0xc] %vm3_vm0, %v59_v21   ;;  %174 = vst.msk [vmem:[%s483_s1 + $0x6] ss:$16 sm:$0x30] %vm3_vm0, %v59_v21  }
  0x80   :  { %v69_v22 = vpop.permute.xlu0 %68  }
  0x81   :  { %v79_v23 = vpop.permute.xlu1 %78   ;;  %175 = vst.msk [vmem:[%s483_s1 + $0x7] ss:$16 sm:$0x3] %vm3_vm0, %v69_v22   ;;  %176 = vst.msk [vmem:[%s483_s1 + $0x7] ss:$16 sm:$0xc] %vm3_vm0, %v69_v22  }
  0x82   :  { %177 = vst.msk [vmem:[%s483_s1 + $0x7] ss:$16 sm:$0x30] %vm3_vm0, %v69_v22   ;;  %178 = vst.msk [vmem:[%s483_s1 + $0x8] ss:$16 sm:$0x3] %vm3_vm0, %v79_v23  }
  0x83   :  { %179 = vst.msk [vmem:[%s483_s1 + $0x8] ss:$16 sm:$0xc] %vm3_vm0, %v79_v23   ;;  %180 = vst.msk [vmem:[%s483_s1 + $0x8] ss:$16 sm:$0x30] %vm3_vm0, %v79_v23  }
  0x84   :  { %v89_v24 = vpop.permute.xlu0 %88  }
  0x85   :  { %v99_v25 = vpop.permute.xlu1 %98   ;;  %181 = vst.msk [vmem:[%s483_s1 + $0x9] ss:$16 sm:$0x3] %vm3_vm0, %v89_v24   ;;  %182 = vst.msk [vmem:[%s483_s1 + $0x9] ss:$16 sm:$0xc] %vm3_vm0, %v89_v24  }
  0x86   :  { %183 = vst.msk [vmem:[%s483_s1 + $0x9] ss:$16 sm:$0x30] %vm3_vm0, %v89_v24   ;;  %184 = vst.msk [vmem:[%s483_s1 + $0xa] ss:$16 sm:$0x3] %vm3_vm0, %v99_v25  }
  0x87   :  { %185 = vst.msk [vmem:[%s483_s1 + $0xa] ss:$16 sm:$0xc] %vm3_vm0, %v99_v25   ;;  %186 = vst.msk [vmem:[%s483_s1 + $0xa] ss:$16 sm:$0x30] %vm3_vm0, %v99_v25  }
  0x88   :  { %v109_v26 = vpop.permute.xlu0 %108  }
  0x89   :  { %v119_v27 = vpop.permute.xlu1 %118   ;;  %187 = vst.msk [vmem:[%s483_s1 + $0xb] ss:$16 sm:$0x3] %vm3_vm0, %v109_v26   ;;  %188 = vst.msk [vmem:[%s483_s1 + $0xb] ss:$16 sm:$0xc] %vm3_vm0, %v109_v26  }
  0x8a   :  { %189 = vst.msk [vmem:[%s483_s1 + $0xb] ss:$16 sm:$0x30] %vm3_vm0, %v109_v26   ;;  %190 = vst.msk [vmem:[%s483_s1 + $0xc] ss:$16 sm:$0x3] %vm3_vm0, %v119_v27  }
  0x8b   :  { %191 = vst.msk [vmem:[%s483_s1 + $0xc] ss:$16 sm:$0xc] %vm3_vm0, %v119_v27   ;;  %192 = vst.msk [vmem:[%s483_s1 + $0xc] ss:$16 sm:$0x30] %vm3_vm0, %v119_v27  }
  0x8c   :  { %v129_v28 = vpop.permute.xlu0 %128  }
  0x8d   :  { %v139_v29 = vpop.permute.xlu1 %138   ;;  %193 = vst.msk [vmem:[%s483_s1 + $0xd] ss:$16 sm:$0x3] %vm3_vm0, %v129_v28   ;;  %194 = vst.msk [vmem:[%s483_s1 + $0xd] ss:$16 sm:$0xc] %vm3_vm0, %v129_v28  }
  0x8e   :  { %195 = vst.msk [vmem:[%s483_s1 + $0xd] ss:$16 sm:$0x30] %vm3_vm0, %v129_v28   ;;  %196 = vst.msk [vmem:[%s483_s1 + $0xe] ss:$16 sm:$0x3] %vm3_vm0, %v139_v29  }
  0x8f   :  { %197 = vst.msk [vmem:[%s483_s1 + $0xe] ss:$16 sm:$0xc] %vm3_vm0, %v139_v29   ;;  %198 = vst.msk [vmem:[%s483_s1 + $0xe] ss:$16 sm:$0x30] %vm3_vm0, %v139_v29  }
  0x90   :  { %v149_v30 = vpop.permute.xlu0 %148  }
  0x91   :  { %199 = vst.msk [vmem:[%s483_s1 + $0xf] ss:$16 sm:$0x3] %vm3_vm0, %v149_v30   ;;  %200 = vst.msk [vmem:[%s483_s1 + $0xf] ss:$16 sm:$0xc] %vm3_vm0, %v149_v30  }
  0x92   :  { %201 = vst.msk [vmem:[%s483_s1 + $0xf] ss:$16 sm:$0x30] %vm3_vm0, %v149_v30  }

// kernel: deepant_forward.1
= control target key start
LH: loop header
LB: loop body
LE: loop exit
PB: predicated region body
PF: predicated region fallthrough
CT: control target
= control target key end

     0   :  { %v819_v1 = vmov 0   ;;  %vm217_vm0 = vcmask 523264   ;;  %vm534_vm1 = vcmask 1043456   ;;  %vm515_vm2 = vcmask 457728   ;;  %s1056_s0 = inlined_call_operand.vmem [shape: bf16[64,256], index: 0, kind: input, shape index: {}]   ;;  %s1057_s1 = inlined_call_operand.vmem [shape: bf16[120,64], index: 1, kind: input, shape index: {}]   ;;  %s1058_s2 = inlined_call_operand.vmem [shape: f32[120,1], index: 2, kind: input, shape index: {}]   ;;  %s1059_s4 = inlined_call_operand.vmem [shape: f32[96,1], index: 4, kind: input, shape index: {}]   ;;  %s1060_s6 = inlined_call_operand.vmem [shape: f32[16,1], index: 6, kind: input, shape index: {}]   ;;  %s1061_s3 = inlined_call_operand.vmem [shape: bf16[96,56], index: 3, kind: input, shape index: {}]   ;;  %s1062_s5 = inlined_call_operand.vmem [shape: bf16[16,48], index: 5, kind: input, shape index: {}]   ;;  %s1063_s7 = inlined_call_operand.vmem [shape: f32[16,256], index: 7, kind: output, shape index: {}]  }
   0x1   :  { %v792_v0 = vld [vmem:[%s1056_s0 + $0x4] ss:$8 sps:$4 sm:$0xff]   ;;  %274 = vmatprep.mubr.bf16.mxu0 %v819_v1  ;;  %791 = vset.pattern.permute.xlu1 %v819_v1  ;;  %v794_v2 = vld [vmem:[%s1056_s0] ss:$8 sps:$4 sm:$0xff]   ;;  %v795_v3 = vld [vmem:[%s1056_s0 + $0x14] ss:$8 sps:$4 sm:$0xff]  }
   0x2   :  { %790 = vset.pattern.permute.xlu0 %v819_v1  ;;  %573 = vmatprep.mubr.bf16.mxu1 %v819_v1  ;;  %v797_v4 = vld [vmem:[%s1056_s0 + $0x10] ss:$8 sps:$4 sm:$0xff]   ;;  %v798_v5 = vld [vmem:[%s1056_s0 + $0x24] ss:$8 sps:$4 sm:$0xff]   ;;  %v800_v6 = vld [vmem:[%s1056_s0 + $0x20] ss:$8 sps:$4 sm:$0xff]  }
   0x3   :  { %242 = vmatprep.subr.bf16.mxu0 %v792_v0  ;;  %v801_v7 = vld [vmem:[%s1056_s0 + $0x34] ss:$8 sps:$4 sm:$0xff]   ;;  %v803_v8 = vld [vmem:[%s1056_s0 + $0x30] ss:$8 sps:$4 sm:$0xff]   ;;  %v50_v10 = vld [vmem:[%s1058_s2] sm:$0xff]  ;;  %vm695_vm3 = vcmask 392192  }
   0x4   :  { %243 = vmatpush1.bf16.msra.mxu0 %v794_v2  ;;  %v52_v9 = vld [vmem:[%s1058_s2 + $0x10] sm:$0xff]  ;;  %67 = vperm.xlu0 %790, %v50_v10   ;;  %v804_v11 = vld [vmem:[%s1057_s1] sm:$0xff]   ;;  %v53_v12 = vld [vmem:[%s1058_s2 + $0x18] sm:$0xff] }
   0x5   :  { %244 = vmatprep.subr.bf16.mxu0 %v795_v3  ;;  %77 = vperm.xlu1 %791, %v52_v9   ;;  %v51_v13 = vld [vmem:[%s1058_s2 + $0x8] sm:$0xff]  ;;  %v54_v15 = vld [vmem:[%s1058_s2 + $0x20] sm:$0xff]  ;;  %v57_v17 = vld [vmem:[%s1058_s2 + $0x38] sm:$0xff] }
   0x6   :  { %v55_v14 = vld [vmem:[%s1058_s2 + $0x28] sm:$0xff]  ;;  %v56_v18 = vld [vmem:[%s1058_s2 + $0x30] sm:$0xff]  ;;  %v58_v20 = vld [vmem:[%s1058_s2 + $0x40] sm:$0xff] }
   0x7   :  { %v805_v16 = vld [vmem:[%s1057_s1 + $0x8] sm:$0xff]   ;;  %v806_v21 = vld [vmem:[%s1057_s1 + $0x10] sm:$0xff]   ;;  %v61_v22 = vld [vmem:[%s1058_s2 + $0x58] sm:$0xff] }
   0x8   :  { %245 = vmatpush1.bf16.msra.mxu0 %v797_v4  ;;  %72 = vperm.xlu0 %790, %v51_v13   ;;  %v59_v19 = vld [vmem:[%s1058_s2 + $0x48] sm:$0xff]  ;;  %v60_v23 = vld [vmem:[%s1058_s2 + $0x50] sm:$0xff]  ;;  %v62_v25 = vld [vmem:[%s1058_s2 + $0x60] sm:$0xff] }
   0x9   :  { %246 = vmatprep.subr.bf16.mxu0 %v798_v5  ;;  %82 = vperm.xlu1 %791, %v53_v12   ;;  %v63_v24 = vld [vmem:[%s1058_s2 + $0x68] sm:$0xff]  ;;  %v807_v26 = vld [vmem:[%s1057_s1 + $0x18] sm:$0xff]   ;;  %v413_v28 = vld [vmem:[%s1059_s4] sm:$0xff] }
   0xa   :  { %v414_v27 = vld [vmem:[%s1059_s4 + $0x8] sm:$0xff]  ;;  %v416_v29 = vld [vmem:[%s1059_s4 + $0x18] sm:$0xff]  ;;  %v415_v30 = vld [vmem:[%s1059_s4 + $0x10] sm:$0xff] }
   0xb   :  { %v808_v31 = vld [vmem:[%s1057_s1 + $0x20] sm:$0xff]   ;;  %v418_v32 = vld [vmem:[%s1059_s4 + $0x28] sm:$0xff]  ;;  %v420_v34 = vld [vmem:[%s1059_s4 + $0x38] sm:$0xff] }
   0xc   :  { %247 = vmatpush1.bf16.msra.mxu0 %v800_v6  ;;  %87 = vperm.xlu0 %790, %v54_v15   ;;  %v417_v33 = vld [vmem:[%s1059_s4 + $0x20] sm:$0xff]  ;;  %v419_v35 = vld [vmem:[%s1059_s4 + $0x30] sm:$0xff]  ;;  %v809_v36 = vld [vmem:[%s1057_s1 + $0x28] sm:$0xff]  }
   0xd   :  { %248 = vmatprep.subr.bf16.mxu0 %v801_v7  ;;  %92 = vperm.xlu1 %791, %v55_v14   ;;  %v422_v37 = vld [vmem:[%s1059_s4 + $0x48] sm:$0xff]  ;;  %v421_v38 = vld [vmem:[%s1059_s4 + $0x40] sm:$0xff]  ;;  %v424_v39 = vld [vmem:[%s1059_s4 + $0x58] sm:$0xff] }
   0xe   :  { %v423_v40 = vld [vmem:[%s1059_s4 + $0x50] sm:$0xff]  ;;  %v679_v42 = vld [vmem:[%s1060_s6 + $0x8] sm:$0xff]  ;;  %v678_v43 = vld [vmem:[%s1060_s6] sm:$0xff] }
   0xf   :  { %v810_v41 = vld [vmem:[%s1057_s1 + $0x30] sm:$0xff]  }
  0x10   :  { %249 = vmatpush1.bf16.msra.mxu0 %v803_v8  ;;  %97 = vperm.xlu0 %790, %v56_v18  }
  0x11   :  { %102 = vperm.xlu1 %791, %v57_v17  }
  0x13   :  { %766 = vmatmul.mubr.msk.bf16.vlgmr.msra.gmra.mrb[0].mxu0 %vm217_vm0, %v804_v11 }
  0x14   :  { %284 = vmatprep.mubr.bf16.mxu0 %v819_v1  ;;  %107 = vperm.xlu0 %790, %v58_v20  }
  0x15   :  { %112 = vperm.xlu1 %791, %v59_v19  }
  0x18   :  { %117 = vperm.xlu0 %790, %v60_v23  }
  0x19   :  { %122 = vperm.xlu1 %791, %v61_v22  }
  0x1b   :  { %767 = vmatmul.mubr.msk.bf16.gmra.mrb[4].mxu0 %vm217_vm0, %v805_v16 }
  0x1c   :  { %294 = vmatprep.mubr.bf16.mxu0 %v819_v1  ;;  %127 = vperm.xlu0 %790, %v62_v25  }
  0x1d   :  { %132 = vperm.xlu1 %791, %v63_v24  }
  0x20   :  { %427 = vperm.xlu0 %790, %v413_v28  }
  0x21   :  { %432 = vperm.xlu1 %791, %v414_v27  }
  0x23   :  { %768 = vmatmul.mubr.msk.bf16.gmra.mrb[8].mxu0 %vm217_vm0, %v806_v21 }
  0x24   :  { %304 = vmatprep.mubr.bf16.mxu0 %v819_v1  ;;  %437 = vperm.xlu0 %790, %v415_v30  }
  0x25   :  { %442 = vperm.xlu1 %791, %v416_v29  }
  0x28   :  { %447 = vperm.xlu0 %790, %v417_v33  }
  0x29   :  { %452 = vperm.xlu1 %791, %v418_v32  }
  0x2b   :  { %769 = vmatmul.mubr.msk.bf16.gmra.mrb[12].mxu0 %vm217_vm0, %v807_v26 }
  0x2c   :  { %314 = vmatprep.mubr.bf16.mxu0 %v819_v1  ;;  %457 = vperm.xlu0 %790, %v419_v35  }
  0x2d   :  { %462 = vperm.xlu1 %791, %v420_v34  }
  0x30   :  { %467 = vperm.xlu0 %790, %v421_v38  }
  0x31   :  { %472 = vperm.xlu1 %791, %v422_v37  }
  0x33   :  { %770 = vmatmul.mubr.msk.bf16.gmra.mrb[16].mxu0 %vm217_vm0, %v808_v31 }
  0x34   :  { %324 = vmatprep.mubr.bf16.mxu0 %v819_v1  ;;  %477 = vperm.xlu0 %790, %v423_v40  }
  0x35   :  { %482 = vperm.xlu1 %791, %v424_v39  }
  0x38   :  { %682 = vperm.xlu0 %790, %v678_v43  }
  0x39   :  { %687 = vperm.xlu1 %791, %v679_v42  }
  0x3b   :  { %771 = vmatmul.mubr.msk.bf16.gmra.mrb[20].mxu0 %vm217_vm0, %v809_v36 }
  0x3c   :  { %334 = vmatprep.mubr.bf16.mxu0 %v819_v1 }
  0x43   :  { %772 = vmatmul.mubr.msk.bf16.gmra.mrb[24].mxu0 %vm217_vm0, %v810_v41 }
  0x44   :  { %344 = vmatprep.mubr.bf16.mxu0 %v819_v1 }
  0x83   :  { %v68_v44 = vpop.permute.xlu0 %67 }
  0x84   :  { %v78_v53 = vpop.permute.xlu1 %77 }
  0x87   :  { %v73_v48 = vpop.permute.xlu0 %72 }
  0x88   :  { %v83_v0 = vpop.permute.xlu1 %82 }
  0x8b   :  { %v88_v12 = vpop.permute.xlu0 %87 }
  0x8c   :  { %v93_v18 = vpop.permute.xlu1 %92 }
  0x8f   :  { %v98_v30 = vpop.permute.xlu0 %97 }
  0x90   :  { %v103_v35 = vpop.permute.xlu1 %102 }
  0xe6   :  { %v276_v45 = vpop.f32.mrb[0].mxu0 }
  0xe7   :  { %v277_v46 = vadd.f32 %v276_v45, %v68_v44  ;;  %v278_v47 = vpop.f32.mrb[1].mxu0 }
  0xe8   :  { %v279_v49 = vadd.f32 %v278_v47, %v68_v44  ;;  %v280_v50 = vpop.f32.mrb[2].mxu0 }
  0xe9   :  { %v281_v51 = vadd.f32 %v280_v50, %v73_v48  ;;  %v282_v52 = vpop.f32.mrb[3].mxu0  ;;  %v351_v55 = vmax.f32 %v277_v46, 0.0  ;;  %v108_v46 = vpop.permute.xlu0 %107 }
  0xea   :  { %v283_v54 = vadd.f32 %v282_v52, %v73_v48  ;;  %v352_v57 = vmax.f32 %v279_v49, 0.0  ;;  %v113_v52 = vpop.permute.xlu1 %112 }
  0xeb   :  { %v353_v56 = vmax.f32 %v281_v51, 0.0 }
  0xec   :  { %v354_v58 = vmax.f32 %v283_v54, 0.0 }
  0xed   :  { %v379_v59 = vmax.f32 %v351_v55, %v353_v56 }
  0xee   :  { %v286_v60 = vpop.f32.mrb[4].mxu0  ;;  %v380_v61 = vmax.f32 %v352_v57, %v354_v58 }
  0xef   :  { %v287_v62 = vadd.f32 %v286_v60, %v78_v53  ;;  %v288_v63 = vpop.f32.mrb[5].mxu0 }
  0xf0   :  { %v289_v2 = vadd.f32 %v288_v63, %v78_v53  ;;  %v290_v3 = vpop.f32.mrb[6].mxu0 }
  0xf1   :  { %v291_v4 = vadd.f32 %v290_v3, %v83_v0  ;;  %v292_v5 = vpop.f32.mrb[7].mxu0  ;;  %v355_v7 = vmax.f32 %v287_v62, 0.0 }
  0xf2   :  { %v293_v6 = vadd.f32 %v292_v5, %v83_v0  ;;  %v356_v9 = vmax.f32 %v289_v2, 0.0  ;;  %v118_v0 = vpop.permute.xlu0 %117 }
  0xf3   :  { %v357_v8 = vmax.f32 %v291_v4, 0.0 }
  0xf4   :  { %v358_v10 = vmax.f32 %v293_v6, 0.0  ;;  %v123_v6 = vpop.permute.xlu1 %122 }
  0xf5   :  { %v381_v11 = vmax.f32 %v355_v7, %v357_v8 }
  0xf6   :  { %v296_v13 = vpop.f32.mrb[8].mxu0  ;;  %v382_v14 = vmax.f32 %v356_v9, %v358_v10 }
  0xf7   :  { %v297_v15 = vadd.f32 %v296_v13, %v88_v12  ;;  %v298_v16 = vpop.f32.mrb[9].mxu0  ;;  %v393_v17 = vpack.c.bf16 %v381_v11, %v379_v59 }
  0xf8   :  { %v299_v19 = vadd.f32 %v298_v16, %v88_v12  ;;  %v300_v20 = vpop.f32.mrb[10].mxu0  ;;  %v394_v21 = vpack.c.bf16 %v382_v14, %v380_v61 }
  0xf9   :  { %v301_v22 = vadd.f32 %v300_v20, %v93_v18  ;;  %v302_v23 = vpop.f32.mrb[11].mxu0  ;;  %v359_v25 = vmax.f32 %v297_v15, 0.0 }
  0xfa   :  { %v303_v24 = vadd.f32 %v302_v23, %v93_v18  ;;  %541 = vmatprep.subr.bf16.mxu1 %v394_v21  ;;  %v360_v27 = vmax.f32 %v299_v19, 0.0  ;;  %v133_v23 = vpop.permute.xlu1 %132 }
  0xfb   :  { %v361_v26 = vmax.f32 %v301_v22, 0.0  ;;  %542 = vmatpush1.bf16.msra.mxu1 %v393_v17  ;;  %v128_v17 = vpop.permute.xlu0 %127 }
  0xfc   :  { %v362_v28 = vmax.f32 %v303_v24, 0.0 }
  0xfd   :  { %v383_v29 = vmax.f32 %v359_v25, %v361_v26 }
  0xfe   :  { %v384_v31 = vmax.f32 %v360_v27, %v362_v28  ;;  %v306_v32 = vpop.f32.mrb[12].mxu0 }
  0xff   :  { %v307_v33 = vadd.f32 %v306_v32, %v98_v30  ;;  %v308_v34 = vpop.f32.mrb[13].mxu0 }
 0x100   :  { %v309_v36 = vadd.f32 %v308_v34, %v98_v30  ;;  %v310_v37 = vpop.f32.mrb[14].mxu0 }
 0x101   :  { %v311_v38 = vadd.f32 %v310_v37, %v103_v35  ;;  %v312_v39 = vpop.f32.mrb[15].mxu0  ;;  %v363_v41 = vmax.f32 %v307_v33, 0.0 }
 0x102   :  { %v313_v40 = vadd.f32 %v312_v39, %v103_v35  ;;  %v364_v43 = vmax.f32 %v309_v36, 0.0  ;;  %v811_v39 = vld [vmem:[%s1061_s3] sm:$0xff]  }
 0x103   :  { %v365_v42 = vmax.f32 %v311_v38, 0.0 }
 0x104   :  { %v366_v44 = vmax.f32 %v313_v40, 0.0  ;;  %v812_v40 = vld [vmem:[%s1061_s3 + $0x8] sm:$0xff]  }
 0x105   :  { %v385_v45 = vmax.f32 %v363_v41, %v365_v42  ;;  %v813_v41 = vld [vmem:[%s1061_s3 + $0x10] sm:$0xff]   ;;  %v814_v42 = vld [vmem:[%s1061_s3 + $0x18] sm:$0xff]  }
 0x106   :  { %v386_v47 = vmax.f32 %v364_v43, %v366_v44  ;;  %v316_v48 = vpop.f32.mrb[16].mxu0  ;;  %v815_v43 = vld [vmem:[%s1061_s3 + $0x20] sm:$0xff]   ;;  %v816_v44 = vld [vmem:[%s1061_s3 + $0x28] sm:$0xff]  }
 0x107   :  { %v317_v49 = vadd.f32 %v316_v48, %v108_v46  ;;  %v318_v50 = vpop.f32.mrb[17].mxu0  ;;  %v395_v51 = vpack.c.bf16 %v385_v45, %v383_v29  ;;  %v818_v45 = vld [vmem:[%s1057_s1 + $0x38] ss:$0 sps:$4 sm:$0xff]   ;;  %v428_v48 = vpop.permute.xlu0 %427 }
 0x108   :  { %v319_v53 = vadd.f32 %v318_v50, %v108_v46  ;;  %v320_v54 = vpop.f32.mrb[18].mxu0  ;;  %v396_v55 = vpack.c.bf16 %v386_v47, %v384_v31  ;;  %773 = vmatmul.mubr.msk.bf16.gmra.mrb[28].mxu0 %vm217_vm0, %v818_v45 }
 0x109   :  { %v321_v56 = vadd.f32 %v320_v54, %v113_v52  ;;  %v322_v57 = vpop.f32.mrb[19].mxu0  ;;  %v367_v59 = vmax.f32 %v317_v49, 0.0 }
 0x10a   :  { %v323_v58 = vadd.f32 %v322_v57, %v113_v52  ;;  %543 = vmatprep.subr.bf16.mxu1 %v396_v55  ;;  %v368_v61 = vmax.f32 %v319_v53, 0.0 }
 0x10b   :  { %v369_v60 = vmax.f32 %v321_v56, 0.0  ;;  %544 = vmatpush1.bf16.msra.mxu1 %v395_v51  ;;  %v433_v51 = vpop.permute.xlu1 %432  ;;  %v438_v53 = vpop.permute.xlu0 %437 }
 0x10c   :  { %v370_v62 = vmax.f32 %v323_v58, 0.0 }
 0x10d   :  { %v387_v63 = vmax.f32 %v367_v59, %v369_v60 }
 0x10e   :  { %v388_v2 = vmax.f32 %v368_v61, %v370_v62  ;;  %v326_v3 = vpop.f32.mrb[20].mxu0 }
 0x10f   :  { %v327_v4 = vadd.f32 %v326_v3, %v118_v0  ;;  %v328_v5 = vpop.f32.mrb[21].mxu0 }
 0x110   :  { %v329_v7 = vadd.f32 %v328_v5, %v118_v0  ;;  %v330_v8 = vpop.f32.mrb[22].mxu0 }
 0x111   :  { %v331_v9 = vadd.f32 %v330_v8, %v123_v6  ;;  %v332_v10 = vpop.f32.mrb[23].mxu0  ;;  %v371_v12 = vmax.f32 %v327_v4, 0.0 }
 0x112   :  { %v333_v11 = vadd.f32 %v332_v10, %v123_v6  ;;  %v372_v14 = vmax.f32 %v329_v7, 0.0 }
 0x113   :  { %v373_v13 = vmax.f32 %v331_v9, 0.0 }
 0x114   :  { %v374_v15 = vmax.f32 %v333_v11, 0.0 }
 0x115   :  { %v389_v16 = vmax.f32 %v371_v12, %v373_v13 }
 0x116   :  { %v390_v18 = vmax.f32 %v372_v14, %v374_v15  ;;  %v336_v19 = vpop.f32.mrb[24].mxu0 }
 0x117   :  { %v337_v20 = vadd.f32 %v336_v19, %v128_v17  ;;  %v338_v21 = vpop.f32.mrb[25].mxu0  ;;  %v397_v22 = vpack.c.bf16 %v389_v16, %v387_v63 }
 0x118   :  { %v339_v24 = vadd.f32 %v338_v21, %v128_v17  ;;  %v340_v25 = vpop.f32.mrb[26].mxu0  ;;  %v398_v26 = vpack.c.bf16 %v390_v18, %v388_v2  ;;  %v448_v17 = vpop.permute.xlu0 %447 }
 0x119   :  { %v341_v27 = vadd.f32 %v340_v25, %v133_v23  ;;  %v342_v28 = vpop.f32.mrb[27].mxu0  ;;  %v375_v30 = vmax.f32 %v337_v20, 0.0 }
 0x11a   :  { %v343_v29 = vadd.f32 %v342_v28, %v133_v23  ;;  %545 = vmatprep.subr.bf16.mxu1 %v398_v26  ;;  %v376_v32 = vmax.f32 %v339_v24, 0.0 }
 0x11b   :  { %v377_v31 = vmax.f32 %v341_v27, 0.0  ;;  %546 = vmatpush1.bf16.msra.mxu1 %v397_v22 }
 0x11c   :  { %v378_v33 = vmax.f32 %v343_v29, 0.0  ;;  %v458_v23 = vpop.permute.xlu0 %457 }
 0x11d   :  { %v391_v34 = vmax.f32 %v375_v30, %v377_v31 }
 0x11e   :  { %v392_v35 = vmax.f32 %v376_v32, %v378_v33 }
 0x11f   :  { %v399_v36 = vpack.c.bf16 %v391_v34, %v391_v34 }
 0x120   :  { %v400_v37 = vpack.c.bf16 %v392_v35, %v392_v35 }
 0x121   :  { %v536_v38 = vsel %vm534_vm1, %v399_v36, 0 }
 0x122   :  { %780 = vmatprep.subr.msk.bf16.mxu1 %vm534_vm1, %v400_v37 }
 0x123   :  { %548 = vmatpush1.bf16.msra.mxu1 %v536_v38 }
 0x126   :  { %781 = vmatmul.mubr.msk.bf16.vlgmr.msra.gmra.mrb[0].mxu1 %vm515_vm2, %v811_v39 }
 0x127   :  { %583 = vmatprep.mubr.bf16.mxu1 %v819_v1 }
 0x12e   :  { %782 = vmatmul.mubr.msk.bf16.gmra.mrb[4].mxu1 %vm515_vm2, %v812_v40 }
 0x12f   :  { %593 = vmatprep.mubr.bf16.mxu1 %v819_v1 }
 0x136   :  { %783 = vmatmul.mubr.msk.bf16.gmra.mrb[8].mxu1 %vm515_vm2, %v813_v41 }
 0x137   :  { %603 = vmatprep.mubr.bf16.mxu1 %v819_v1 }
 0x13e   :  { %784 = vmatmul.mubr.msk.bf16.gmra.mrb[12].mxu1 %vm515_vm2, %v814_v42 }
 0x13f   :  { %613 = vmatprep.mubr.bf16.mxu1 %v819_v1 }
 0x146   :  { %785 = vmatmul.mubr.msk.bf16.gmra.mrb[16].mxu1 %vm515_vm2, %v815_v43 }
 0x147   :  { %623 = vmatprep.mubr.bf16.mxu1 %v819_v1 }
 0x14e   :  { %786 = vmatmul.mubr.msk.bf16.gmra.mrb[20].mxu1 %vm515_vm2, %v816_v44 }
 0x14f   :  { %731 = vmatprep.mubr.bf16.mxu1 %v819_v1  ;;  %v443_v1 = vpop.permute.xlu1 %442 }
 0x153   :  { %v453_v21 = vpop.permute.xlu1 %452 }
 0x157   :  { %v463_v29 = vpop.permute.xlu1 %462 }
 0x1f9   :  { %v575_v46 = vpop.f32.mrb[0].mxu1 }
 0x1fa   :  { %v577_v47 = vpop.f32.mrb[1].mxu1  ;;  %v576_v52 = vadd.f32 %v575_v46, %v428_v48 }
 0x1fb   :  { %v579_v49 = vpop.f32.mrb[2].mxu1  ;;  %v578_v54 = vadd.f32 %v577_v47, %v428_v48 }
 0x1fc   :  { %v581_v50 = vpop.f32.mrb[3].mxu1  ;;  %v580_v56 = vadd.f32 %v579_v49, %v433_v51  ;;  %v634_v62 = vmax.f32 %v576_v52, 0.0 }
 0x1fd   :  { %v582_v59 = vadd.f32 %v581_v50, %v433_v51  ;;  %v635_v3 = vmax.f32 %v578_v54, 0.0  ;;  %v468_v51 = vpop.permute.xlu0 %467 }
 0x1fe   :  { %v636_v6 = vmax.f32 %v580_v56, 0.0 }
 0x1ff   :  { %v637_v9 = vmax.f32 %v582_v59, 0.0 }
 0x201   :  { %v585_v55 = vpop.f32.mrb[4].mxu1 }
 0x202   :  { %v586_v57 = vadd.f32 %v585_v55, %v438_v53  ;;  %v587_v58 = vpop.f32.mrb[5].mxu1  ;;  %v473_v55 = vpop.permute.xlu1 %472 }
 0x203   :  { %v588_v60 = vadd.f32 %v587_v58, %v438_v53  ;;  %v589_v61 = vpop.f32.mrb[6].mxu1 }
 0x204   :  { %v638_v63 = vmax.f32 %v586_v57, 0.0  ;;  %v590_v0 = vadd.f32 %v589_v61, %v443_v1  ;;  %v591_v2 = vpop.f32.mrb[7].mxu1  ;;  %v478_v57 = vpop.permute.xlu0 %477 }
 0x205   :  { %v639_v4 = vmax.f32 %v588_v60, 0.0  ;;  %v592_v5 = vadd.f32 %v591_v2, %v443_v1 }
 0x206   :  { %v658_v7 = vmax.f32 %v634_v62, %v638_v63  ;;  %v640_v8 = vmax.f32 %v590_v0, 0.0  ;;  %v483_v62 = vpop.permute.xlu1 %482 }
 0x207   :  { %v659_v10 = vmax.f32 %v635_v3, %v639_v4  ;;  %v641_v11 = vmax.f32 %v592_v5, 0.0 }
 0x208   :  { %v660_v12 = vmax.f32 %v636_v6, %v640_v8 }
 0x209   :  { %v661_v13 = vmax.f32 %v637_v9, %v641_v11  ;;  %v595_v14 = vpop.f32.mrb[8].mxu1 }
 0x20a   :  { %v670_v15 = vpack.c.bf16 %v660_v12, %v658_v7  ;;  %v597_v16 = vpop.f32.mrb[9].mxu1  ;;  %v596_v22 = vadd.f32 %v595_v14, %v448_v17 }
 0x20b   :  { %v599_v18 = vpop.f32.mrb[10].mxu1  ;;  %v671_v19 = vpack.c.bf16 %v661_v13, %v659_v10  ;;  %v598_v24 = vadd.f32 %v597_v16, %v448_v17 }
 0x20c   :  { %v601_v20 = vpop.f32.mrb[11].mxu1  ;;  %v600_v26 = vadd.f32 %v599_v18, %v453_v21  ;;  %v642_v33 = vmax.f32 %v596_v22, 0.0 }
 0x20d   :  { %699 = vmatprep.subr.bf16.mxu1 %v671_v19  ;;  %v602_v30 = vadd.f32 %v601_v20, %v453_v21  ;;  %v643_v37 = vmax.f32 %v598_v24, 0.0  ;;  %v817_v20 = vld [vmem:[%s1062_s5] sm:$0xff]   ;;  %v346_v21 = vpop.f32.mrb[28].mxu0 }
 0x20e   :  { %700 = vmatpush1.bf16.msra.mxu1 %v670_v15  ;;  %v644_v40 = vmax.f32 %v600_v26, 0.0  ;;  %v347_v22 = vpop.f32.mrb[29].mxu0 }
 0x20f   :  { %v645_v43 = vmax.f32 %v602_v30, 0.0 }
 0x211   :  { %v605_v25 = vpop.f32.mrb[12].mxu1 }
 0x212   :  { %v606_v27 = vadd.f32 %v605_v25, %v458_v23  ;;  %v607_v28 = vpop.f32.mrb[13].mxu1  ;;  %v683_v25 = vpop.permute.xlu0 %682 }
 0x213   :  { %v608_v31 = vadd.f32 %v607_v28, %v458_v23  ;;  %v609_v32 = vpop.f32.mrb[14].mxu1  ;;  %v348_v23 = vpop.f32.mrb[30].mxu0 }
 0x214   :  { %v646_v34 = vmax.f32 %v606_v27, 0.0  ;;  %v610_v35 = vadd.f32 %v609_v32, %v463_v29  ;;  %v611_v36 = vpop.f32.mrb[15].mxu1  ;;  %v349_v24 = vpop.f32.mrb[31].mxu0 }
 0x215   :  { %v647_v38 = vmax.f32 %v608_v31, 0.0  ;;  %v612_v39 = vadd.f32 %v611_v36, %v463_v29  ;;  %v688_v29 = vpop.permute.xlu1 %687 }
 0x216   :  { %v662_v41 = vmax.f32 %v642_v33, %v646_v34  ;;  %v648_v42 = vmax.f32 %v610_v35, 0.0 }
 0x217   :  { %v663_v44 = vmax.f32 %v643_v37, %v647_v38  ;;  %v649_v45 = vmax.f32 %v612_v39, 0.0 }
 0x218   :  { %v664_v46 = vmax.f32 %v644_v40, %v648_v42 }
 0x219   :  { %v665_v47 = vmax.f32 %v645_v43, %v649_v45  ;;  %v615_v48 = vpop.f32.mrb[16].mxu1 }
 0x21a   :  { %v672_v49 = vpack.c.bf16 %v664_v46, %v662_v41  ;;  %v617_v50 = vpop.f32.mrb[17].mxu1  ;;  %v616_v56 = vadd.f32 %v615_v48, %v468_v51 }
 0x21b   :  { %v619_v52 = vpop.f32.mrb[18].mxu1  ;;  %v673_v53 = vpack.c.bf16 %v665_v47, %v663_v44  ;;  %v618_v58 = vadd.f32 %v617_v50, %v468_v51 }
 0x21c   :  { %v621_v54 = vpop.f32.mrb[19].mxu1  ;;  %v620_v59 = vadd.f32 %v619_v52, %v473_v55  ;;  %v650_v3 = vmax.f32 %v616_v56, 0.0 }
 0x21d   :  { %701 = vmatprep.subr.bf16.mxu1 %v673_v53  ;;  %v622_v63 = vadd.f32 %v621_v54, %v473_v55  ;;  %v651_v7 = vmax.f32 %v618_v58, 0.0 }
 0x21e   :  { %702 = vmatpush1.bf16.msra.mxu1 %v672_v49  ;;  %v652_v10 = vmax.f32 %v620_v59, 0.0 }
 0x21f   :  { %v653_v13 = vmax.f32 %v622_v63, 0.0 }
 0x221   :  { %v625_v1 = vpop.f32.mrb[20].mxu1 }
 0x222   :  { %v626_v60 = vadd.f32 %v625_v1, %v478_v57  ;;  %v627_v61 = vpop.f32.mrb[21].mxu1 }
 0x223   :  { %v628_v0 = vadd.f32 %v627_v61, %v478_v57  ;;  %v629_v2 = vpop.f32.mrb[22].mxu1 }
 0x224   :  { %v654_v4 = vmax.f32 %v626_v60, 0.0  ;;  %v630_v5 = vadd.f32 %v629_v2, %v483_v62  ;;  %v631_v6 = vpop.f32.mrb[23].mxu1 }
 0x225   :  { %v655_v8 = vmax.f32 %v628_v0, 0.0  ;;  %v632_v9 = vadd.f32 %v631_v6, %v483_v62 }
 0x226   :  { %v666_v11 = vmax.f32 %v650_v3, %v654_v4  ;;  %v656_v12 = vmax.f32 %v630_v5, 0.0 }
 0x227   :  { %v667_v14 = vmax.f32 %v651_v7, %v655_v8  ;;  %v657_v15 = vmax.f32 %v632_v9, 0.0 }
 0x228   :  { %v668_v16 = vmax.f32 %v652_v10, %v656_v12 }
 0x229   :  { %v669_v17 = vmax.f32 %v653_v13, %v657_v15 }
 0x22a   :  { %v674_v18 = vpack.c.bf16 %v668_v16, %v666_v11 }
 0x22b   :  { %v675_v19 = vpack.c.bf16 %v669_v17, %v667_v14 }
 0x22d   :  { %703 = vmatprep.subr.bf16.mxu1 %v675_v19 }
 0x22e   :  { %704 = vmatpush1.bf16.msra.mxu1 %v674_v18 }
 0x231   :  { %788 = vmatmul.mubr.msk.bf16.vlgmr.msra.gmra.mrb[24].mxu1 %vm695_vm3, %v817_v20 }
 0x304   :  { %v733_v26 = vpop.f32.mrb[24].mxu1 }
 0x305   :  { %v734_v27 = vadd.f32 %v733_v26, %v683_v25  ;;  %v735_v28 = vpop.f32.mrb[25].mxu1 }
 0x306   :  { %v736_v30 = vadd.f32 %v735_v28, %v683_v25  ;;  %v737_v31 = vpop.f32.mrb[26].mxu1 }
 0x307   :  { %742 = vst [vmem:[%s1063_s7] sm:$0xff] %v734_v27  ;;  %v738_v32 = vadd.f32 %v737_v31, %v688_v29  ;;  %v739_v33 = vpop.f32.mrb[27].mxu1 }
 0x308   :  { %743 = vst [vmem:[%s1063_s7 + $0x8] sm:$0xff] %v736_v30  ;;  %v740_v34 = vadd.f32 %v739_v33, %v688_v29 }
 0x309   :  { %744 = vst [vmem:[%s1063_s7 + $0x10] sm:$0xff] %v738_v32 }
 0x30a   :  { %745 = vst [vmem:[%s1063_s7 + $0x18] sm:$0xff] %v740_v34 }

</bundles_post_ra>
